<compile_context>
chip_gen: v7x
topology: tpu7x:2x2x1
jax: 0.10.0
libtpu: 0.0.40
codegen_flags: <defaults>
</compile_context>

<pallas_src>
import jax
import jax.numpy as jnp
from jax.experimental import pallas as pl
from jax.experimental.pallas import tpu as pltpu


def _round_up(x, m):
    return ((x + m - 1) // m) * m


def _wce_kernel(x_ref, t_ref, w_ref, out_ref, m_sc, l_sc, lt_sc, wt_sc):
    cj = pl.program_id(1)
    nc = pl.num_programs(1)

    @pl.when(cj == 0)
    def _():
        m_sc[...] = jnp.full_like(m_sc, -jnp.inf)
        l_sc[...] = jnp.zeros_like(l_sc)
        lt_sc[...] = jnp.zeros_like(lt_sc)
        wt_sc[...] = jnp.zeros_like(wt_sc)

    x = x_ref[...].astype(jnp.float32)          # (TN, CK) upcast on the VPU
    t = t_ref[...]                              # (TN, 1) int32 targets
    w = w_ref[...]                              # (1, CK) f32 class weights
    tn, ck = x.shape

    # Global column index for this C block (TPU needs >= 2-D iota).
    col = jax.lax.broadcasted_iota(jnp.int32, (tn, ck), 1) + cj * ck
    hit = col == t                              # never matches pad rows (t = -1)

    # Online (flash-style) logsumexp update.
    m_prev = m_sc[...]
    m_new = jnp.maximum(m_prev, jnp.max(x, axis=-1, keepdims=True))
    l_sc[...] = l_sc[...] * jnp.exp(m_prev - m_new) + jnp.sum(
        jnp.exp(x - m_new), axis=-1, keepdims=True)
    m_sc[...] = m_new

    # Target logit / target-class weight via masked select (no f32 one-hot).
    lt_sc[...] += jnp.sum(jnp.where(hit, x, 0.0), axis=-1, keepdims=True)
    wt_sc[...] += jnp.sum(jnp.where(hit, w, 0.0), axis=-1, keepdims=True)

    @pl.when(cj == nc - 1)
    def _():
        lse = jnp.log(l_sc[...]) + m_sc[...]
        nll = lse - lt_sc[...]                  # per-sample NLL
        w_t = wt_sc[...]
        num = jnp.sum(w_t * nll)                # tile partial numerator
        den = jnp.sum(w_t)                      # tile partial denominator
        # Single lane-dense (1, 8, 128) store: sublane 0 = num, sublane 1 = den.
        sub = jax.lax.broadcasted_iota(jnp.int32, out_ref.shape, 1)
        out_ref[...] = jnp.where(sub == 0, num,
                                 jnp.where(sub == 1, den, 0.0)).astype(jnp.float32)


def weighted_cross_entropy_loss(logits, targets, weight, *, row_tile=None,
                                c_tile=None):
    """PyTorch F.cross_entropy(logits, targets, weight=weight, reduction='mean').

    logits: (N, C) float (f32/bf16), targets: (N,) int, weight: (C,) float.
    Returns a scalar f32. NOTE: out-of-range / negative targets contribute
    zero weight (PyTorch would raise); a zero weight sum yields NaN/Inf,
    matching PyTorch's edge behavior.
    """
    n, c = logits.shape
    itemsize = jnp.dtype(logits.dtype).itemsize
    # Sublane packing: 8 rows/f32, 16 rows/bf16, 32 rows/8-bit per vreg.
    smul = {1: 32, 2: 16}.get(itemsize, 8)

    # Per-generation VMEM budget (v7x: 64 MiB physical, v5e/v6e: 128 MiB).
    try:
        vmem_cap = int(pltpu.get_tpu_info().vmem_capacity_bytes)
    except Exception:
        vmem_cap = 64 * 1024 * 1024
    vmem_budget = min(vmem_cap * 3 // 4, 96 * 1024 * 1024)

    # Class-axis tiling (lane dim, multiple of 128). Large C streams in blocks.
    C_TILE_MAX = 2048
    c128 = _round_up(c, 128)
    if c_tile is not None:
        ck = _round_up(min(c_tile, c128), 128)
    else:
        ck = min(c128, C_TILE_MAX)
    c_pad = _round_up(c128, ck)
    num_c_tiles = c_pad // ck

    # Row tile: ~4 MiB of logits per grid step, capped by the real VMEM
    # footprint (2x double-buffered logits + ~4 f32 temps per element +
    # lane-padded (TN,1) f32 scratch x4).
    TARGET_BLOCK_BYTES = 4 * 1024 * 1024
    per_row_bytes = ck * (2 * itemsize + 16) + 4 * 128 * 4
    if row_tile is None:
        tn = TARGET_BLOCK_BYTES // max(1, ck * itemsize)
    else:
        tn = row_tile
    tn_vmem = max(smul, (vmem_budget - (1 << 20)) // per_row_bytes)
    tn = min(tn, tn_vmem)

    n_rounded = _round_up(max(n, 1), smul)
    # Keep >= 2 row tiles when possible so the "parallel" axis can actually
    # split across both TensorCores on v7x.
    if n_rounded > smul:
        tn = min(tn, _round_up((n_rounded + 1) // 2, smul))
    tn = min(tn, n_rounded)
    tn = max(smul, (tn // smul) * smul)

    n_pad = _round_up(n, tn)
    num_row_tiles = n_pad // tn

    # Pad classes with a dtype-aware large-negative logit (exp -> 0) and zero
    # weight; pad rows with zeros and target = -1 (contribute nothing).
    pad_val = float(jnp.finfo(logits.dtype).min) / 2
    x = logits
    if c_pad != c:
        x = jnp.pad(x, ((0, 0), (0, c_pad - c)), constant_values=pad_val)
    if n_pad != n:
        x = jnp.pad(x, ((0, n_pad - n), (0, 0)))

    t = targets.astype(jnp.int32)
    if n_pad != n:
        t = jnp.pad(t, (0, n_pad - n), constant_values=-1)
    t2d = t.reshape(n_pad, 1)

    w = weight.astype(jnp.float32)
    if c_pad != c:
        w = jnp.pad(w, (0, c_pad - c))
    w2d = w.reshape(1, c_pad)

    out = pl.pallas_call(
        _wce_kernel,
        out_shape=jax.ShapeDtypeStruct((num_row_tiles, 8, 128), jnp.float32),
        grid=(num_row_tiles, num_c_tiles),
        in_specs=[
            pl.BlockSpec((tn, ck), lambda i, j: (i, j)),
            pl.BlockSpec((tn, 1), lambda i, j: (i, 0)),
            pl.BlockSpec((1, ck), lambda i, j: (0, j)),
        ],
        out_specs=pl.BlockSpec((1, 8, 128), lambda i, j: (i, 0, 0)),
        scratch_shapes=[pltpu.VMEM((tn, 1), jnp.float32) for _ in range(4)],
        compiler_params=pltpu.CompilerParams(
            dimension_semantics=("parallel", "arbitrary"),
            vmem_limit_bytes=int(vmem_budget),
        ),
    )(x, t2d, w2d)

    # Tiny final reduction over per-tile partials in plain XLA.
    num = jnp.sum(out[:, 0, 0])
    den = jnp.sum(out[:, 1, 0])
    return num / den


def _reference(logits, targets, weight):
    """Pure-JAX reference for PyTorch weighted cross_entropy ('mean')."""
    lf = logits.astype(jnp.float32)
    logp = jax.nn.log_softmax(lf, axis=-1)
    nll = -jnp.take_along_axis(logp, targets[:, None].astype(jnp.int32), axis=-1)[:, 0]
    w_t = weight.astype(jnp.float32)[targets]
    return jnp.sum(w_t * nll) / jnp.sum(w_t)


if __name__ == "__main__":
    key = jax.random.PRNGKey(0)
    k1, k2, k3, k4, k5, k6, k7 = jax.random.split(key, 7)

    # Test 1: small f32 case (C padded 8 -> 128; megacore row split -> 2 tiles).
    N1, C1 = 16, 8
    logits1 = jax.random.normal(k1, (N1, C1), dtype=jnp.float32)
    targets1 = jax.random.randint(k2, (N1,), 0, C1, dtype=jnp.int32)
    weight1 = jax.random.uniform(k3, (C1,), dtype=jnp.float32, minval=0.5, maxval=1.5)
    loss1 = jax.block_until_ready(weighted_cross_entropy_loss(logits1, targets1, weight1))
    ref1 = _reference(logits1, targets1, weight1)
    assert jnp.allclose(loss1, ref1, rtol=1e-5, atol=1e-5), (loss1, ref1)

    # Test 2: bf16 logits, N not a multiple of the 16-row bf16 sublane pack,
    # multi-row-tile grid (exercises row padding + bf16-aligned tiles).
    N2, C2 = 37, 10
    logits2 = jax.random.normal(k4, (N2, C2), dtype=jnp.float32).astype(jnp.bfloat16)
    targets2 = jax.random.randint(k5, (N2,), 0, C2, dtype=jnp.int32)
    weight2 = jax.random.uniform(k3, (C2,), dtype=jnp.float32, minval=0.5, maxval=1.5)
    loss2 = jax.block_until_ready(
        weighted_cross_entropy_loss(logits2, targets2, weight2, row_tile=16))
    ref2 = _reference(logits2, targets2, weight2)
    assert jnp.allclose(loss2, ref2, rtol=1e-4, atol=1e-4), (loss2, ref2)

    # Test 3: multiple C tiles (forced small c_tile) -> exercises the online
    # (flash-style) logsumexp accumulation across the "arbitrary" class axis.
    N3, C3 = 12, 300
    logits3 = jax.random.normal(k6, (N3, C3), dtype=jnp.float32)
    targets3 = jax.random.randint(k7, (N3,), 0, C3, dtype=jnp.int32)
    weight3 = jax.random.uniform(k3, (C3,), dtype=jnp.float32, minval=0.5, maxval=1.5)
    loss3 = jax.block_until_ready(
        weighted_cross_entropy_loss(logits3, targets3, weight3, c_tile=128))
    ref3 = _reference(logits3, targets3, weight3)
    assert jnp.allclose(loss3, ref3, rtol=1e-5, atol=1e-5), (loss3, ref3)

    print("KERNEL_OK")
</pallas_src>

<mosaic_0001>
module attributes {stable_mosaic.version = 11 : i64} {
  func.func @_wce_kernel(%arg0: i32, %arg1: i32, %arg2: memref<8x128xf32, #tpu.memory_space<vmem>>, %arg3: memref<8x1xi32, #tpu.memory_space<vmem>>, %arg4: memref<1x128xf32, #tpu.memory_space<vmem>>, %arg5: memref<1x8x128xf32, #tpu.memory_space<vmem>>, %arg6: memref<8x1xf32, #tpu.memory_space<vmem>>, %arg7: memref<8x1xf32, #tpu.memory_space<vmem>>, %arg8: memref<8x1xf32, #tpu.memory_space<vmem>>, %arg9: memref<8x1xf32, #tpu.memory_space<vmem>>) attributes {dimension_semantics = [#tpu.dimension_semantics<parallel>, #tpu.dimension_semantics<arbitrary>], iteration_bounds = array<i64: 2, 1>, scalar_prefetch = 0 : i64, scratch_operands = 4 : i64, tpu.core_type = #tpu.core_type<tc>, window_params = [{transform_indices = @transform_0, window_bounds = array<i64: 8, 128>}, {transform_indices = @transform_1, window_bounds = array<i64: 8, 1>}, {transform_indices = @transform_2, window_bounds = array<i64: 1, 128>}, {transform_indices = @transform_3, window_bounds = array<i64: 1, 8, 128>}]} {
    %c0_i32 = arith.constant 0 : i32
    %0 = arith.cmpi eq, %arg1, %c0_i32 : i32
    %1 = arith.extui %0 : i1 to i32
    %c0_i32_0 = arith.constant 0 : i32
    %2 = arith.cmpi ne, %1, %c0_i32_0 : i32
    scf.if %2 {
      %cst_29 = arith.constant 0xFF800000 : f32
      %47 = vector.broadcast %cst_29 : f32 to vector<8x1xf32>
      %c0_30 = arith.constant 0 : index
      %c0_31 = arith.constant 0 : index
      %48 = vector.load %arg6[%c0_30, %c0_31] : memref<8x1xf32, #tpu.memory_space<vmem>>, vector<8x1xf32>
      tpu.vector_store %arg6[%c0_30, %c0_31], %47 {strides = array<i32>} : memref<8x1xf32, #tpu.memory_space<vmem>>, vector<8x1xf32>,
      %cst_32 = arith.constant 0.000000e+00 : f32
      %49 = vector.broadcast %cst_32 : f32 to vector<8x1xf32>
      %c0_33 = arith.constant 0 : index
      %c0_34 = arith.constant 0 : index
      %50 = vector.load %arg7[%c0_33, %c0_34] : memref<8x1xf32, #tpu.memory_space<vmem>>, vector<8x1xf32>
      tpu.vector_store %arg7[%c0_33, %c0_34], %49 {strides = array<i32>} : memref<8x1xf32, #tpu.memory_space<vmem>>, vector<8x1xf32>,
      %cst_35 = arith.constant 0.000000e+00 : f32
      %51 = vector.broadcast %cst_35 : f32 to vector<8x1xf32>
      %c0_36 = arith.constant 0 : index
      %c0_37 = arith.constant 0 : index
      %52 = vector.load %arg8[%c0_36, %c0_37] : memref<8x1xf32, #tpu.memory_space<vmem>>, vector<8x1xf32>
      tpu.vector_store %arg8[%c0_36, %c0_37], %51 {strides = array<i32>} : memref<8x1xf32, #tpu.memory_space<vmem>>, vector<8x1xf32>,
      %cst_38 = arith.constant 0.000000e+00 : f32
      %53 = vector.broadcast %cst_38 : f32 to vector<8x1xf32>
      %c0_39 = arith.constant 0 : index
      %c0_40 = arith.constant 0 : index
      %54 = vector.load %arg9[%c0_39, %c0_40] : memref<8x1xf32, #tpu.memory_space<vmem>>, vector<8x1xf32>
      tpu.vector_store %arg9[%c0_39, %c0_40], %53 {strides = array<i32>} : memref<8x1xf32, #tpu.memory_space<vmem>>, vector<8x1xf32>,
    } else {
    }
    %c0 = arith.constant 0 : index
    %c0_1 = arith.constant 0 : index
    %3 = vector.load %arg2[%c0, %c0_1] : memref<8x128xf32, #tpu.memory_space<vmem>>, vector<8x128xf32>
    %c0_2 = arith.constant 0 : index
    %c0_3 = arith.constant 0 : index
    %4 = vector.load %arg3[%c0_2, %c0_3] : memref<8x1xi32, #tpu.memory_space<vmem>>, vector<8x1xi32>
    %c0_4 = arith.constant 0 : index
    %c0_5 = arith.constant 0 : index
    %5 = vector.load %arg4[%c0_4, %c0_5] : memref<1x128xf32, #tpu.memory_space<vmem>>, vector<1x128xf32>
    %6 = tpu.iota {dimensions = array<i32: 1>} : vector<8x128xi32>
    %c128_i32 = arith.constant 128 : i32
    %7 = arith.muli %arg1, %c128_i32 : i32
    %8 = vector.broadcast %7 : i32 to vector<8x128xi32>
    %9 = arith.addi %6, %8 : vector<8x128xi32>
    %10 = vector.broadcast %4 : vector<8x1xi32> to vector<8x128xi32>
    %11 = arith.cmpi eq, %9, %10 : vector<8x128xi32>
    %c0_6 = arith.constant 0 : index
    %c0_7 = arith.constant 0 : index
    %12 = vector.load %arg6[%c0_6, %c0_7] : memref<8x1xf32, #tpu.memory_space<vmem>>, vector<8x1xf32>
    %cst = arith.constant dense<0xFF800000> : vector<8xf32>
    %13 = vector.multi_reduction <maximumf>, %3, %cst [1] : vector<8x128xf32> to vector<8xf32>
    %14 = vector.shape_cast %13 : vector<8xf32> to vector<8x1xf32>
    %15 = arith.maximumf %12, %14 : vector<8x1xf32>
    %c0_8 = arith.constant 0 : index
    %c0_9 = arith.constant 0 : index
    %16 = vector.load %arg7[%c0_8, %c0_9] : memref<8x1xf32, #tpu.memory_space<vmem>>, vector<8x1xf32>
    %17 = arith.subf %12, %15 : vector<8x1xf32>
    %18 = math.exp %17 : vector<8x1xf32>
    %19 = arith.mulf %16, %18 : vector<8x1xf32>
    %20 = vector.broadcast %15 : vector<8x1xf32> to vector<8x128xf32>
    %21 = arith.subf %3, %20 : vector<8x128xf32>
    %22 = math.exp %21 : vector<8x128xf32>
    %cst_10 = arith.constant dense<0.000000e+00> : vector<8xf32>
    %23 = vector.multi_reduction <add>, %22, %cst_10 [1] : vector<8x128xf32> to vector<8xf32>
    %24 = vector.shape_cast %23 : vector<8xf32> to vector<8x1xf32>
    %25 = arith.addf %19, %24 : vector<8x1xf32>
    %c0_11 = arith.constant 0 : index
    %c0_12 = arith.constant 0 : index
    %26 = vector.load %arg7[%c0_11, %c0_12] : memref<8x1xf32, #tpu.memory_space<vmem>>, vector<8x1xf32>
    tpu.vector_store %arg7[%c0_11, %c0_12], %25 {strides = array<i32>} : memref<8x1xf32, #tpu.memory_space<vmem>>, vector<8x1xf32>,
    %c0_13 = arith.constant 0 : index
    %c0_14 = arith.constant 0 : index
    %27 = vector.load %arg6[%c0_13, %c0_14] : memref<8x1xf32, #tpu.memory_space<vmem>>, vector<8x1xf32>
    tpu.vector_store %arg6[%c0_13, %c0_14], %15 {strides = array<i32>} : memref<8x1xf32, #tpu.memory_space<vmem>>, vector<8x1xf32>,
    %c0_15 = arith.constant 0 : index
    %c0_16 = arith.constant 0 : index
    %28 = vector.load %arg8[%c0_15, %c0_16] : memref<8x1xf32, #tpu.memory_space<vmem>>, vector<8x1xf32>
    %cst_17 = arith.constant 0.000000e+00 : f32
    %29 = vector.broadcast %cst_17 : f32 to vector<8x128xf32>
    %30 = arith.select %11, %3, %29 : vector<8x128xi1>, vector<8x128xf32>
    %cst_18 = arith.constant dense<0.000000e+00> : vector<8xf32>
    %31 = vector.multi_reduction <add>, %30, %cst_18 [1] : vector<8x128xf32> to vector<8xf32>
    %32 = vector.shape_cast %31 : vector<8xf32> to vector<8x1xf32>
    %33 = arith.addf %28, %32 : vector<8x1xf32>
    %c0_19 = arith.constant 0 : index
    %c0_20 = arith.constant 0 : index
    %34 = vector.load %arg8[%c0_19, %c0_20] : memref<8x1xf32, #tpu.memory_space<vmem>>, vector<8x1xf32>
    tpu.vector_store %arg8[%c0_19, %c0_20], %33 {strides = array<i32>} : memref<8x1xf32, #tpu.memory_space<vmem>>, vector<8x1xf32>,
    %c0_21 = arith.constant 0 : index
    %c0_22 = arith.constant 0 : index
    %35 = vector.load %arg9[%c0_21, %c0_22] : memref<8x1xf32, #tpu.memory_space<vmem>>, vector<8x1xf32>
    %cst_23 = arith.constant 0.000000e+00 : f32
    %36 = vector.shape_cast %5 : vector<1x128xf32> to vector<1x128xf32>
    %37 = vector.broadcast %36 : vector<1x128xf32> to vector<8x128xf32>
    %38 = vector.broadcast %cst_23 : f32 to vector<8x128xf32>
    %39 = arith.select %11, %37, %38 : vector<8x128xi1>, vector<8x128xf32>
    %cst_24 = arith.constant dense<0.000000e+00> : vector<8xf32>
    %40 = vector.multi_reduction <add>, %39, %cst_24 [1] : vector<8x128xf32> to vector<8xf32>
    %41 = vector.shape_cast %40 : vector<8xf32> to vector<8x1xf32>
    %42 = arith.addf %35, %41 : vector<8x1xf32>
    %c0_25 = arith.constant 0 : index
    %c0_26 = arith.constant 0 : index
    %43 = vector.load %arg9[%c0_25, %c0_26] : memref<8x1xf32, #tpu.memory_space<vmem>>, vector<8x1xf32>
    tpu.vector_store %arg9[%c0_25, %c0_26], %42 {strides = array<i32>} : memref<8x1xf32, #tpu.memory_space<vmem>>, vector<8x1xf32>,
    %c0_i32_27 = arith.constant 0 : i32
    %44 = arith.cmpi eq, %arg1, %c0_i32_27 : i32
    %45 = arith.extui %44 : i1 to i32
    %c0_i32_28 = arith.constant 0 : i32
    %46 = arith.cmpi ne, %45, %c0_i32_28 : i32
    scf.if %46 {
      %c0_29 = arith.constant 0 : index
      %c0_30 = arith.constant 0 : index
      %47 = vector.load %arg7[%c0_29, %c0_30] : memref<8x1xf32, #tpu.memory_space<vmem>>, vector<8x1xf32>
      %48 = math.log %47 : vector<8x1xf32>
      %c0_31 = arith.constant 0 : index
      %c0_32 = arith.constant 0 : index
      %49 = vector.load %arg6[%c0_31, %c0_32] : memref<8x1xf32, #tpu.memory_space<vmem>>, vector<8x1xf32>
      %50 = arith.addf %48, %49 : vector<8x1xf32>
      %c0_33 = arith.constant 0 : index
      %c0_34 = arith.constant 0 : index
      %51 = vector.load %arg8[%c0_33, %c0_34] : memref<8x1xf32, #tpu.memory_space<vmem>>, vector<8x1xf32>
      %52 = arith.subf %50, %51 : vector<8x1xf32>
      %c0_35 = arith.constant 0 : index
      %c0_36 = arith.constant 0 : index
      %53 = vector.load %arg9[%c0_35, %c0_36] : memref<8x1xf32, #tpu.memory_space<vmem>>, vector<8x1xf32>
      %54 = arith.mulf %53, %52 : vector<8x1xf32>
      %55 = vector.shape_cast %54 : vector<8x1xf32> to vector<1x8x1xf32>
      %cst_37 = arith.constant dense<0.000000e+00> : vector<1xf32>
      %56 = vector.multi_reduction <add>, %55, %cst_37 [1, 2] : vector<1x8x1xf32> to vector<1xf32>
      %57 = vector.shape_cast %56 : vector<1xf32> to vector<1x1x1xf32>
      %58 = vector.extract %57[0, 0, 0] : f32 from vector<1x1x1xf32>
      %59 = vector.shape_cast %53 : vector<8x1xf32> to vector<1x8x1xf32>
      %cst_38 = arith.constant dense<0.000000e+00> : vector<1xf32>
      %60 = vector.multi_reduction <add>, %59, %cst_38 [1, 2] : vector<1x8x1xf32> to vector<1xf32>
      %61 = vector.shape_cast %60 : vector<1xf32> to vector<1x1x1xf32>
      %62 = vector.extract %61[0, 0, 0] : f32 from vector<1x1x1xf32>
      %63 = tpu.iota {dimensions = array<i32: 1>} : vector<1x8x128xi32>
      %c0_i32_39 = arith.constant 0 : i32
      %64 = vector.broadcast %c0_i32_39 : i32 to vector<1x8x128xi32>
      %65 = arith.cmpi eq, %63, %64 : vector<1x8x128xi32>
      %c1_i32 = arith.constant 1 : i32
      %66 = vector.broadcast %c1_i32 : i32 to vector<1x8x128xi32>
      %67 = arith.cmpi eq, %63, %66 : vector<1x8x128xi32>
      %cst_40 = arith.constant 0.000000e+00 : f32
      %68 = vector.broadcast %62 : f32 to vector<1x8x128xf32>
      %69 = vector.broadcast %cst_40 : f32 to vector<1x8x128xf32>
      %70 = arith.select %67, %68, %69 : vector<1x8x128xi1>, vector<1x8x128xf32>
      %71 = vector.broadcast %58 : f32 to vector<1x8x128xf32>
      %72 = arith.select %65, %71, %70 : vector<1x8x128xi1>, vector<1x8x128xf32>
      %c0_41 = arith.constant 0 : index
      %c0_42 = arith.constant 0 : index
      %c0_43 = arith.constant 0 : index
      %73 = vector.load %arg5[%c0_41, %c0_42, %c0_43] : memref<1x8x128xf32, #tpu.memory_space<vmem>>, vector<1x8x128xf32>
      tpu.vector_store %arg5[%c0_41, %c0_42, %c0_43], %72 {strides = array<i32>} : memref<1x8x128xf32, #tpu.memory_space<vmem>>, vector<1x8x128xf32>,
    } else {
    }
    return
  }
  func.func @transform_0(%arg0: i32, %arg1: i32) -> (i32, i32) {
    %c0_i32 = arith.constant 0 : i32
    return %arg0, %arg1 : i32, i32
  }
  func.func @transform_1(%arg0: i32, %arg1: i32) -> (i32, i32) {
    %c0_i32 = arith.constant 0 : i32
    %c0_i32_0 = arith.constant 0 : i32
    return %arg0, %c0_i32 : i32, i32
  }
  func.func @transform_2(%arg0: i32, %arg1: i32) -> (i32, i32) {
    %c0_i32 = arith.constant 0 : i32
    %c0_i32_0 = arith.constant 0 : i32
    return %c0_i32, %arg1 : i32, i32
  }
  func.func @transform_3(%arg0: i32, %arg1: i32) -> (i32, i32, i32) {
    %c0_i32 = arith.constant 0 : i32
    %c0_i32_0 = arith.constant 0 : i32
    %c0_i32_1 = arith.constant 0 : i32
    return %arg0, %c0_i32, %c0_i32_0 : i32, i32, i32
  }
}

</mosaic_0001>

<bundles_post_ra>
// kernel: tpu_custom_call.1
= control target key start
LH: loop header
LB: loop body
LE: loop exit
PB: predicated region body
PF: predicated region fallthrough
CT: control target
= control target key end

     0   :  { %8 = vsyncpa [#allocation7], 0  ;;  %s747_s0 = inlined_call_operand.vmem [shape: f32[16,128], index: 0, kind: input, shape index: {}]   ;;  %s748_s1 = inlined_call_operand.vmem [shape: s32[16,1], index: 1, kind: input, shape index: {}]   ;;  %s749_s2 = inlined_call_operand.vmem [shape: f32[1,128], index: 2, kind: input, shape index: {}]   ;;  %s750_s3 = inlined_call_operand.hbm [shape: f32[2,8,128], index: 3, kind: output, shape index: {}]  }
   0x1   :  { %10 = vsyncpa [#allocation7 + $0x1], 0  ;;  %s619_s12 = smov 0   ;;  %s621_s13 = smov 0  }
   0x2   :  { %s623_s14 = smov 0   ;;  %s625_s15 = smov 0  }
   0x3   :  { %s627_s16 = smov 0   ;;  %s629_s17 = smov 0  }
   0x4 LB: > { %s431_s18 = sadd.s32 4294967295, %s593_s17   ;;  %s432_s19 = sadd.s32 4294967294, %s593_s17   ;;  %s593_s17 = sphi %s629_s17, %s16_s17   ;;  %s589_s16 = sphi %s627_s16, %s757_s16   ;;  %s585_s15 = sphi %s625_s15, %s756_s15   ;;  %s581_s14 = sphi %s623_s14, %s755_s14   ;;  %s577_s13 = sphi %s621_s13, %s754_s13   ;;  %s573_s12 = sphi %s619_s12, %s753_s12  }
   0x5   : > { %s28_s20 = sadd.s32 1, %s589_s16  ;;  %s115_s21 = sadd.s32 1, %s581_s14 }
   0x6   : > { %p30_p0 = scmp.ge.s32.totalorder %s28_s20, 2  ;;  %p125_p1 = scmp.ne.s32.totalorder %s581_s14, %s577_s13 }
   0x7   : > { %p126_p2 = scmp.eq.s32.totalorder %s431_s18, 1  ;;  %p131_p3 = scmp.ne.s32.totalorder %s577_s13, %s573_s12 }
   0x8   : > { %s759_s20 = smov (%p30_p0, %s28_s20), 0  ;;  %p132_p5 = scmp.eq.s32.totalorder %s432_s19, 1 }
   0x9   : > { %p659_p4 = por %p126_p2, %p125_p1  ;;  %s112_s23 = ssub.s32 %s589_s16, %s759_s20 }
   0xa   : > { %p436_p6 = scmp.ge.s32.totalorder %s593_s17, 1  ;;  %p113_p7 = scmp.eq.s32.totalorder %s112_s23, 0 }
   0xb   : > { %p666_p8 = por %p132_p5, %p131_p3  ;;  %p173_p9 = scmp.lt.s32.totalorder %s593_s17, 3 }
   0xc   : > { %s672_s25 = scalar_select %p113_p7, %s581_s14, %s115_s21  }
   0xd   : > { %p174_p10 = pnand %p436_p6, %p173_p9 }
   0xe   : > { %p206_p11 = scmp.lt.s32.totalorder (!%p174_p10), %s585_s15, 1  ;;  %vm224_vm0 = vcmask (!%p174_p10), 7168   ;;  %v595_v0 = vmov (!%p174_p10), -inf   ;;  %v596_v2 = vmov (!%p174_p10), 0   ;;  %v597_v4 = vmov (!%p174_p10), 0.0   ;;  %s203_s9 = sand.u32 (!%p174_p10), 1, %s577_s13  }
   0xf   : > { %177 = sbr.rel (%p174_p10) target bundleno = 708 (0x2c4), region = 32  ;;  %225 = vst.msk [vmem:[#allocation2] sm:$0xff] (!%p174_p10), %vm224_vm0, %v595_v0  ;;  %507 = vset.pattern.permute.xlu0 (!%p174_p10), %v596_v2  ;;  %508 = vset.pattern.permute.xlu1 (!%p174_p10), %v596_v2  ;;  %226 = vst.msk [vmem:[#allocation3] sm:$0xff] (!%p174_p10), %vm224_vm0, %v597_v4  ;;  %v232_v12 = vlaneseq (!%p174_p10)  ;;  %v440_v17 = vld [vmem:[%s749_s2] ss:$0 sm:$0xff] (!%p174_p10)  ;;  %s437_s10 = sshll.u32 (!%p174_p10), %s203_s9, 3 }
  0x10   : > { %227 = vst.msk [vmem:[#allocation4] sm:$0xff] (!%p174_p10), %vm224_vm0, %v597_v4  ;;  %228 = vst.msk [vmem:[#allocation5] sm:$0xff] (!%p174_p10), %vm224_vm0, %v597_v4  ;;  %s442_s11 = sshll.u32 (!%p174_p10), %s585_s15, 7  ;;  %s205_s19 = scalar_lea.vmem (!%p174_p10), [#allocation6], %s437_s10 }
  0x11   : > { %v233_v13 = vand.u32 (!%p174_p10), 127, %v232_v12  ;;  %v315_v56 = vshrl.u32 (!%p174_p10), %v232_v12, 7  ;;  %s337_s21 = sshll.u32 (!%p174_p10), %s205_s19, 4  ;;  %s700_s28 = scalar_lea.hbm (!%p174_p10), %s750_s3, %s442_s11  ;;  %s702_s21 = int_to_ptr.vmem [resolvable:$true] %s337_s21 }
  0x12   : > { %s515_s29 = scalar_lea.vmem (!%p174_p10), %s702_s21, 128 }
  0x13   : > { %vm317_vm2 = vcmp.eq.s32.totalorder (!%p174_p10), %v315_v56, 1  ;;  %vm316_vm3 = vcmp.eq.s32.totalorder (!%p174_p10), %v315_v56, 0  ;;  %p516_p12 = scmp.ne.s32.totalorder (!%p174_p10), %s702_s21, %s515_s29 }
  0x15   : > { %p517_p13 = pnand (!%p174_p10), %p516_p12, %p659_p4 }
  0x16   : > { %s207_s26 = scalar_select %p206_p11, %s585_s15, 1  ;;  %v241_v5 = vld [vmem:[#allocation2] sm:$0xff]  ;;  %v245_v21 = vld [vmem:[#allocation3] sm:$0xff] }
  0x17   : > { %v264_v25 = vld [vmem:[#allocation4] sm:$0xff]  ;;  %v270_v28 = vld [vmem:[#allocation5] sm:$0xff]  ;;  %s324_s15 = scalar_lea.sflag [#allocation7], %s203_s9  ;;  %p518_p0 = pneg %p517_p13 }
  0x18   : > { %s438_s27 = sshll.u32 %s207_s26, 3 }
  0x19   : > { %s212_s30 = scalar_lea.vmem %s747_s0, %s438_s27  ;;  %s216_s6 = scalar_lea.vmem %s748_s1, %s438_s27 }
  0x1a   : > { %v229_v1 = vld [vmem:[%s212_s30] sm:$0xff]  ;;  %s598_s30 = smov [#allocation6]  }
  0x1b   : > { %242 = vmax.xlane.f32.xlu0 %v229_v1  ;;  %v230_v3 = vld [vmem:[%s216_s6] sm:$0xff]  ;;  %s519_s4 = sshll.u32 %s598_s30, 4  ;;  %s520_s4 = int_to_ptr.vmem [resolvable:$false] %s519_s4 }
  0x1c   : > { %238 = vperm.xlu1 %508, %v230_v3   ;;  %s521_s5 = scalar_lea.vmem %s520_s4, 256  ;;  %p522_p1 = scmp.lt.s32.totalorder %s702_s21, %s520_s4 }
  0x1d   : > { %p523_p2 = scmp.lt.s32.totalorder %s521_s5, %s515_s29 }
  0x1f   : > { %p524_p3 = por %p523_p2, %p522_p1 }
  0x21   : > { %p525_p5 = pnand %p524_p3, %p518_p0 }
  0x9b   : > { %v239_v14 = vpop.permute.xlu1 %238 }
  0x9c   : > { %vm240_vm1 = vcmp.eq.s32.totalorder %v233_v13, %v239_v14 }
  0x9d   : > { %v265_v16 = vsel %vm240_vm1, %v229_v1, 0.0  ;;  %v277_v18 = vsel %vm240_vm1, %v440_v17, 0.0 }
  0xa8   : > { %v243_v6 = vpop.xlane.xlu0 %242 }
  0xa9   : > { %v244_v7 = vmax.f32 %v241_v5, %v243_v6 }
  0xab   : > { %v246_v8 = vsub.f32 %v241_v5, %v244_v7  ;;  %263 = vst.msk [vmem:[#allocation2] sm:$0xff] %vm224_vm0, %v244_v7  ;;  %252 = vperm.xlu0 %507, %v244_v7  }
  0xad   : > { %v247_v19 = vmul.f32 1.442695, %v246_v8 }
  0xb2   : > { %v288_v36 = vld [vmem:[#allocation2] sm:$0xff] }
 0x12a   : > { %v253_v9 = vpop.permute.xlu0 %252 }
 0x12b   : > { %v255_v10 = vsub.f32 %v229_v1, %v253_v9 }
 0x12d   : > { %v256_v11 = vmul.f32 1.442695, %v255_v10 }
 0x12f   : > { %509 = vpow2.f32 %v256_v11 }
 0x130   : > { %511 = vpow2.f32 %v247_v19 }
 0x139   : > { %v510_v15 = vpop.eup %509 }
 0x13a   : > { %258 = vadd.xlane.f32.xlu1 %v510_v15  ;;  %v512_v20 = vpop.eup %511 }
 0x13b   : > { %v249_v22 = vmul.f32 %v512_v20, %v245_v21 }
 0x13e   : > { %266 = vadd.xlane.f32.xlu1 %v265_v16 }
 0x142   : > { %278 = vadd.xlane.f32.xlu1 %v277_v18 }
 0x1c7   : > { %v259_v23 = vpop.xlane.xlu1 %258 }
 0x1c8   : > { %v260_v24 = vadd.f32 %v259_v23, %v249_v22 }
 0x1ca   : > { %262 = vst.msk [vmem:[#allocation3] sm:$0xff] %vm224_vm0, %v260_v24 }
 0x1cb   : > { %v267_v26 = vpop.xlane.xlu1 %266 }
 0x1cc   : > { %v268_v27 = vadd.f32 %v267_v26, %v264_v25 }
 0x1ce   : > { %269 = vst.msk [vmem:[#allocation4] sm:$0xff] %vm224_vm0, %v268_v27 }
 0x1cf   : > { %v279_v29 = vpop.xlane.xlu1 %278 }
 0x1d0   : > { %v280_v30 = vadd.f32 %v279_v29, %v270_v28 }
 0x1d1   : > { %v285_v31 = vld [vmem:[#allocation3] sm:$0xff] }
 0x1d2   : > { %281 = vst.msk [vmem:[#allocation5] sm:$0xff] %vm224_vm0, %v280_v30  ;;  %513 = vlog2.f32 %v285_v31 }
 0x1d5   : > { %v290_v38 = vld [vmem:[#allocation4] sm:$0xff] }
 0x1d9   : > { %v292_v32 = vld [vmem:[#allocation5] sm:$0xff] }
 0x1da   : > { %v304_v33 = vsel %vm224_vm0, %v292_v32, 0.0 }
 0x1db   : > { %305 = vadd.xlane.f32.xlu1 %v304_v33 }
 0x1dc   : > { %v514_v34 = vpop.eup %513 }
 0x1dd   : > { %v287_v35 = vmul.f32 0.6931472, %v514_v34 }
 0x1df   : > { %v289_v37 = vadd.f32 %v288_v36, %v287_v35 }
 0x1e1   : > { %v291_v39 = vsub.f32 %v289_v37, %v290_v38 }
 0x1e3   : > { %v293_v40 = vmul.f32 %v292_v32, %v291_v39 }
 0x1e5   : > { %v294_v41 = vsel %vm224_vm0, %v293_v40, 0.0 }
 0x1e6   : > { %295 = vadd.xlane.f32.xlu0 %v294_v41 }
 0x268   : > { %v306_v42 = vpop.xlane.xlu1 %305 }
 0x269   : > { %v307_v43 = vrot.slane %v306_v42, 4 }
 0x26b   : > { %v308_v44 = vadd.f32 %v307_v43, %v306_v42 }
 0x26d   : > { %v309_v45 = vrot.slane %v308_v44, 2 }
 0x26f   : > { %v310_v49 = vadd.f32 %v309_v45, %v308_v44 }
 0x271   : > { %v311_v52 = vrot.slane %v310_v49, 1 }
 0x273   : > { %v296_v46 = vpop.xlane.xlu0 %295  ;;  %v312_v55 = vadd.f32 %v311_v52, %v310_v49 }
 0x274   : > { %v297_v47 = vrot.slane %v296_v46, 4 }
 0x276   : > { %v298_v48 = vadd.f32 %v297_v47, %v296_v46 }
 0x278   : > { %v299_v50 = vrot.slane %v298_v48, 2 }
 0x27a   : > { %v300_v51 = vadd.f32 %v299_v50, %v298_v48 }
 0x27c   : > { %v301_v53 = vrot.slane %v300_v51, 1 }
 0x27e   : > { %v302_v54 = vadd.f32 %v301_v53, %v300_v51 }
 0x280   : > { %445 = vpush %v302_v54 }
 0x281   : > { %447 = vpush %v312_v55 }
 0x2b1   : > { %s446_s18 = spop %445 }
 0x2b2   : > { %v320_v57 = vstv %s446_s18  ;;  %s448_s23 = spop %447 }
 0x2b3   : > { %v318_v58 = vstv %s448_s23 }
 0x2b4   : > { %v319_v59 = vsel %vm317_vm2, %v318_v58, 0.0 }
 0x2b5   : > { %v321_v60 = vsel %vm316_vm3, %v320_v57, %v319_v59 }
 0x2b6   : > { %322 = vst [vmem:[%s205_s19] sm:$0xff] %v321_v60 }
 0x2b7   : > { %528 = shalt.err (!%p525_p5)
}
 0x2b8   : > { %s529_s6 = scalar_lea.hbm %s700_s28, 128  ;;  %s533_s9 = scalar_lea.hbm %s750_s3, 256 }
 0x2b9   : > { %p530_p6 = scmp.ne.s32.totalorder %s700_s28, %s529_s6  ;;  %p534_p10 = scmp.lt.u32.totalorder %s700_s28, %s750_s3 }
 0x2ba   : > { %p535_p11 = scmp.lt.u32.totalorder %s533_s9, %s529_s6  ;;  %p537_p13 = scmp.lt.u32.totalorder %s529_s6, %s700_s28 }
 0x2bb   : > { %p531_p7 = pnand %p530_p6, %p659_p4 }
 0x2bc   : > { %p536_p12 = por %p535_p11, %p534_p10 }
 0x2bd   : > { %p532_p9 = pneg %p531_p7 }
 0x2be   : > { %p538_p0 = por %p537_p13, %p536_p12 }
 0x2c0   : > { %p539_p1 = pnand %p538_p0, %p532_p9 }
 0x2c2   : > { %542 = shalt.err (!%p539_p1)
}
 0x2c3   : > { %449 = dma.vmem_to_hbm [thread:$0]  (%p659_p4), %s702_s21, 128, %s700_s28, %s324_s15  }
 0x2c4 PF: > { %p455_p2 = scmp.ge.s32.totalorder %s593_s17, 2  ;;  %s349_s18 = sand.u32 1, %s573_s12  }
 0x2c5   : > { %s350_s19 = scalar_lea.sflag [#allocation7], %s349_s18 }
 0x2c6   : > { %p452_p3 = pnand %p455_p2, %p666_p8 }
 0x2c8   : > { %568 = dma.done.wait (!%p452_p3), %s350_s19, 128  }
 0x2c9   : > { %570 = vsyncadd (!%p452_p3), %s350_s19, 4294967168  ;;  %s16_s17 = sadd.s32 1, %s593_s17   ;;  %s753_s12 = smov %s577_s13 }
 0x2ca   : > { %p13_p5 = scmp.ge.s32.totalorder %s16_s17, 4   ;;  %s754_s13 = smov %s581_s14 }
 0x2cb   : > { %s755_s14 = smov %s672_s25  ;;  %s756_s15 = smov %s589_s16 }
 0x2cc   : > { %s757_s16 = smov %s759_s20  ;;  %15 = sbr.rel (!%p13_p5) target bundleno = 4 (0x4), region = 81 }
 0x2d3   :  { %355 = vsyncpa [#allocation7], 1 }
 0x2d4   :  { %357 = vsyncpa [#allocation7 + $0x1], 1 }

</bundles_post_ra>
